<compile_context>
chip_gen: v6e
topology: v6e:2x2x1
jax: 0.10.0
libtpu: 0.0.40
codegen_flags: <defaults>
</compile_context>

<pallas_src>
import functools

import numpy as np
import jax
import jax.numpy as jnp
from jax.experimental import pallas as pl
from jax.experimental.pallas import tpu as pltpu

TWO_PI = 2.0 * np.pi
PI = np.pi
OUT_W = 128  # padded last-layer matmul width (first 4 lanes are the real chis)


def _round_up(x, m):
    return (x + m - 1) // m * m


def _choose_tile(n, target=1024):
    """Row-tile size: `target` by default (sweep 1024-2048 for large N);
    clamped so the 1-D parallel grid yields >= 2 tiles whenever possible
    (v7x has 2 TensorCores).  Multiple of 8 rows for sublane alignment."""
    tm = _round_up(pl.cdiv(n, 2), 8)
    return max(8, min(target, tm))


def _mlm_kernel(c_ref, w1_ref, b1_ref, w2_ref, b2_ref, w3_ref, b3_ref,
                chisup_ref, angle_ref, loss_ref, *, n_rows, tm):
    # ----- angle predictor MLP: bf16 MXU matmuls, f32 accumulation ---------
    x = c_ref[...].astype(jnp.bfloat16)                              # [TM, D]
    h = jnp.dot(x, w1_ref[...],
                preferred_element_type=jnp.float32) + b1_ref[...]
    h = jnp.maximum(h, 0.0).astype(jnp.bfloat16)                     # ReLU
    h = jnp.dot(h, w2_ref[...],
                preferred_element_type=jnp.float32) + b2_ref[...]
    h = jnp.maximum(h, 0.0).astype(jnp.bfloat16)                     # ReLU
    logits = jnp.dot(h, w3_ref[...],
                     preferred_element_type=jnp.float32)             # [TM, 128]
    # sigmoid / scale only on the 4 real chi lanes; lane-narrow store.
    angle = jax.nn.sigmoid(logits[:, :4] + b3_ref[...]) * TWO_PI - PI  # [TM, 4]
    angle_ref[...] = angle

    # ----- per-n_chis masked squared-error partial sums (per tile) ---------
    cs = chisup_ref[...]                                             # [TM, 8]
    chi = cs[:, :4]
    sup = cs[:, 4:]
    # mask out-of-range rows of the (possibly partial) last tile; the where
    # also stops NaN/Inf from garbage edge-rows leaking into the sums.
    row = (jax.lax.broadcasted_iota(jnp.int32, (tm, 4), 0)
           + pl.program_id(0) * tm)
    diff = jnp.where(row < n_rows, angle * sup - chi, 0.0)           # [TM, 4]
    loss_ref[...] = jnp.sum(diff * diff, axis=0,
                            keepdims=True).reshape(1, 1, 4)


@jax.jit
def mlm_forward(c, params, chi, chi_mask, chi_complete, chi_corrupt_flag):
    """Returns (loss_dict, angle_hat) matching the PyTorch forward semantics."""
    B, L, D = c.shape
    N = B * L
    w1, b1, w2, b2, w3, b3 = params

    Dp = _round_up(D, 128)
    TM = _choose_tile(N)
    num_tiles = pl.cdiv(N, TM)

    # --- pad only the (small, grid-resident) weights/biases: padded hidden
    #     channels see zero weights + zero bias -> ReLU(0)=0, exact. ---------
    w1p = jnp.pad(w1.astype(jnp.bfloat16), ((0, 0), (0, Dp - D)))          # [D, Dp]
    w2p = jnp.pad(w2.astype(jnp.bfloat16), ((0, Dp - D), (0, Dp - D)))     # [Dp, Dp]
    w3p = jnp.pad(w3.astype(jnp.bfloat16), ((0, Dp - D), (0, OUT_W - 4)))  # [Dp, 128]
    b1p = jnp.pad(b1.astype(jnp.float32), ((0, 0), (0, Dp - D)))           # [1, Dp]
    b2p = jnp.pad(b2.astype(jnp.float32), ((0, 0), (0, Dp - D)))           # [1, Dp]
    b3f = b3.astype(jnp.float32)                                           # [1, 4]

    # c: free reshape only (no pad / no copy); bf16 cast happens in-kernel.
    c_flat = c.reshape(N, D)

    # --- supervise mask precomputed in the wrapper:
    #     sup[n, k-1] = chi_complete & (chi_mask.sum(-1) >= k) & chi_corrupt
    base = jnp.logical_and(chi_complete.astype(bool),
                           chi_corrupt_flag.astype(bool))                  # [B, L]
    n_chis_data = chi_mask.astype(jnp.float32).sum(-1, keepdims=True)      # [B, L, 1]
    ks = jnp.arange(1, 5, dtype=jnp.float32)                               # [4]
    sup = jnp.logical_and(base[..., None], n_chis_data >= ks)
    # pack chi | sup into one [N, 8] stream (chi lanes 0-3, sup lanes 4-7)
    chisup = jnp.concatenate(
        [chi.astype(jnp.float32).reshape(N, 4),
         sup.astype(jnp.float32).reshape(N, 4)], axis=-1)                  # [N, 8]

    angle_flat, partial = pl.pallas_call(
        functools.partial(_mlm_kernel, n_rows=N, tm=TM),
        out_shape=(jax.ShapeDtypeStruct((N, 4), jnp.float32),
                   jax.ShapeDtypeStruct((num_tiles, 1, 4), jnp.float32)),
        grid=(num_tiles,),
        in_specs=[
            pl.BlockSpec((TM, D), lambda i: (i, 0)),        # c      (tiled)
            pl.BlockSpec((D, Dp), lambda i: (0, 0)),        # w1     (resident)
            pl.BlockSpec((1, Dp), lambda i: (0, 0)),        # b1     (resident)
            pl.BlockSpec((Dp, Dp), lambda i: (0, 0)),       # w2     (resident)
            pl.BlockSpec((1, Dp), lambda i: (0, 0)),        # b2     (resident)
            pl.BlockSpec((Dp, OUT_W), lambda i: (0, 0)),    # w3     (resident)
            pl.BlockSpec((1, 4), lambda i: (0, 0)),         # b3     (resident)
            pl.BlockSpec((TM, 8), lambda i: (i, 0)),        # chi|sup (tiled)
        ],
        out_specs=(
            pl.BlockSpec((TM, 4), lambda i: (i, 0)),        # angle (narrow)
            pl.BlockSpec((1, 1, 4), lambda i: (i, 0, 0)),   # per-tile loss sums
        ),
        compiler_params=pltpu.CompilerParams(
            dimension_semantics=("parallel",)),
    )(c_flat, w1p, b1p, w2p, b2p, w3p, b3f, chisup)

    angle_hat = angle_flat.reshape(B, L, 4)
    # mean over the *global* B*L elements (PyTorch nn.MSELoss 'mean').
    losses = jnp.sum(partial, axis=(0, 1)) / float(N)                      # [4]
    loss_dict = {"mse_%dchis" % k: losses[k - 1] for k in range(1, 5)}
    return loss_dict, angle_hat


def init_params(key, dim):
    """Deterministic init of angle_predictor params (Linear(d,d),Linear(d,d),Linear(d,4))."""
    ks = jax.random.split(key, 6)

    def lin(kw, kb, fan_in, fan_out):
        bound = 1.0 / np.sqrt(fan_in)
        w = jax.random.uniform(kw, (fan_in, fan_out), jnp.float32, -bound, bound)
        b = jax.random.uniform(kb, (1, fan_out), jnp.float32, -bound, bound)
        return w, b

    w1, b1 = lin(ks[0], ks[1], dim, dim)
    w2, b2 = lin(ks[2], ks[3], dim, dim)
    w3, b3 = lin(ks[4], ks[5], dim, 4)
    return (w1, b1, w2, b2, w3, b3)


def _reference(c, params, chi, chi_mask, chi_complete, chi_corrupt_flag):
    """Pure-JAX reference mirroring the kernel numerics (bf16 MXU inputs,
    f32 accumulation / elementwise math)."""
    w1, b1, w2, b2, w3, b3 = params

    def mm(x, w):
        return jnp.dot(x.astype(jnp.bfloat16), w.astype(jnp.bfloat16),
                       preferred_element_type=jnp.float32)

    h = jnp.maximum(mm(c, w1) + b1[0], 0.0)
    h = jnp.maximum(mm(h, w2) + b2[0], 0.0)
    angle = jax.nn.sigmoid(mm(h, w3) + b3[0]) * TWO_PI - PI
    n_chis_data = chi_mask.sum(-1)
    losses = {}
    for k in range(1, 5):
        sup = jnp.logical_and(
            jnp.logical_and(chi_complete, n_chis_data >= k),
            chi_corrupt_flag).astype(jnp.float32)
        losses["mse_%dchis" % k] = jnp.mean(
            (angle[:, :, k - 1] * sup - chi[:, :, k - 1]) ** 2)
    return losses, angle


if __name__ == "__main__":
    B, L, D = 2, 8, 32  # batch, sequence length, node_feat_dim

    key = jax.random.PRNGKey(0)
    kp, kc, kchi, kmask, kcomp, kflag = jax.random.split(key, 6)

    params = init_params(kp, D)

    # encoder output stand-in (see TODO above) and chi-angle supervision data
    c = jax.random.normal(kc, (B, L, D), jnp.float32)
    chi = jax.random.uniform(kchi, (B, L, 4), jnp.float32, -PI, PI)
    chi_mask = (jax.random.uniform(kmask, (B, L, 4)) > 0.3).astype(jnp.float32)
    chi_complete = jax.random.uniform(kcomp, (B, L)) > 0.4
    chi_corrupt_flag = jax.random.uniform(kflag, (B, L)) > 0.5

    loss_dict, angle_hat = mlm_forward(c, params, chi, chi_mask,
                                       chi_complete, chi_corrupt_flag)
    jax.block_until_ready(loss_dict)
    jax.block_until_ready(angle_hat)

    # sanity check against a pure-JAX reference with matching precision
    ref_losses, ref_angle = _reference(c, params, chi, chi_mask,
                                       chi_complete, chi_corrupt_flag)
    assert np.allclose(np.asarray(angle_hat), np.asarray(ref_angle),
                       rtol=2e-2, atol=2e-2)
    for k in range(1, 5):
        name = "mse_%dchis" % k
        assert np.allclose(float(loss_dict[name]), float(ref_losses[name]),
                           rtol=2e-2, atol=2e-2)

    print("KERNEL_OK")
</pallas_src>

<mosaic_0001>
module attributes {stable_mosaic.version = 11 : i64} {
  func.func @_mlm_kernel(%arg0: i32, %arg1: memref<8x32xf32, #tpu.memory_space<vmem>>, %arg2: memref<32x128xbf16, #tpu.memory_space<vmem>>, %arg3: memref<1x128xf32, #tpu.memory_space<vmem>>, %arg4: memref<128x128xbf16, #tpu.memory_space<vmem>>, %arg5: memref<1x128xf32, #tpu.memory_space<vmem>>, %arg6: memref<128x128xbf16, #tpu.memory_space<vmem>>, %arg7: memref<1x4xf32, #tpu.memory_space<vmem>>, %arg8: memref<8x8xf32, #tpu.memory_space<vmem>>, %arg9: memref<8x4xf32, #tpu.memory_space<vmem>>, %arg10: memref<1x1x4xf32, #tpu.memory_space<vmem>>) attributes {dimension_semantics = [#tpu.dimension_semantics<parallel>], iteration_bounds = array<i64: 2>, scalar_prefetch = 0 : i64, scratch_operands = 0 : i64, tpu.core_type = #tpu.core_type<tc>, window_params = [{transform_indices = @transform_0, window_bounds = array<i64: 8, 32>}, {pipeline_mode = #tpu.pipeline_mode<synchronous>, transform_indices = @transform_1, window_bounds = array<i64: 32, 128>}, {pipeline_mode = #tpu.pipeline_mode<synchronous>, transform_indices = @transform_2, window_bounds = array<i64: 1, 128>}, {pipeline_mode = #tpu.pipeline_mode<synchronous>, transform_indices = @transform_3, window_bounds = array<i64: 128, 128>}, {pipeline_mode = #tpu.pipeline_mode<synchronous>, transform_indices = @transform_4, window_bounds = array<i64: 1, 128>}, {pipeline_mode = #tpu.pipeline_mode<synchronous>, transform_indices = @transform_5, window_bounds = array<i64: 128, 128>}, {pipeline_mode = #tpu.pipeline_mode<synchronous>, transform_indices = @transform_6, window_bounds = array<i64: 1, 4>}, {transform_indices = @transform_7, window_bounds = array<i64: 8, 8>}, {transform_indices = @transform_8, window_bounds = array<i64: 8, 4>}, {transform_indices = @transform_9, window_bounds = array<i64: 1, 1, 4>}]} {
    %c0 = arith.constant 0 : index
    %c0_0 = arith.constant 0 : index
    %0 = vector.load %arg1[%c0, %c0_0] : memref<8x32xf32, #tpu.memory_space<vmem>>, vector<8x32xf32>
    %1 = arith.truncf %0 : vector<8x32xf32> to vector<8x32xbf16>
    %c0_1 = arith.constant 0 : index
    %c0_2 = arith.constant 0 : index
    %2 = vector.load %arg2[%c0_1, %c0_2] : memref<32x128xbf16, #tpu.memory_space<vmem>>, vector<32x128xbf16>
    %cst = arith.constant dense<0.000000e+00> : vector<8x128xf32>
    %3 = tpu.matmul %1, %2, %cst {dimension_numbers = #tpu.dot_dimension_numbers<[1], [0], [0], [1], [0, 0, 1, 1], [], []>} : vector<8x32xbf16>, vector<32x128xbf16>, vector<8x128xf32> -> vector<8x128xf32>
    %c0_3 = arith.constant 0 : index
    %c0_4 = arith.constant 0 : index
    %4 = vector.load %arg3[%c0_3, %c0_4] : memref<1x128xf32, #tpu.memory_space<vmem>>, vector<1x128xf32>
    %5 = vector.broadcast %4 : vector<1x128xf32> to vector<8x128xf32>
    %6 = arith.addf %3, %5 : vector<8x128xf32>
    %cst_5 = arith.constant 0.000000e+00 : f32
    %7 = vector.broadcast %cst_5 : f32 to vector<8x128xf32>
    %8 = arith.maximumf %6, %7 : vector<8x128xf32>
    %9 = arith.truncf %8 : vector<8x128xf32> to vector<8x128xbf16>
    %c0_6 = arith.constant 0 : index
    %c0_7 = arith.constant 0 : index
    %10 = vector.load %arg4[%c0_6, %c0_7] : memref<128x128xbf16, #tpu.memory_space<vmem>>, vector<128x128xbf16>
    %cst_8 = arith.constant dense<0.000000e+00> : vector<8x128xf32>
    %11 = tpu.matmul %9, %10, %cst_8 {dimension_numbers = #tpu.dot_dimension_numbers<[1], [0], [0], [1], [0, 0, 1, 1], [], []>} : vector<8x128xbf16>, vector<128x128xbf16>, vector<8x128xf32> -> vector<8x128xf32>
    %c0_9 = arith.constant 0 : index
    %c0_10 = arith.constant 0 : index
    %12 = vector.load %arg5[%c0_9, %c0_10] : memref<1x128xf32, #tpu.memory_space<vmem>>, vector<1x128xf32>
    %13 = vector.broadcast %12 : vector<1x128xf32> to vector<8x128xf32>
    %14 = arith.addf %11, %13 : vector<8x128xf32>
    %cst_11 = arith.constant 0.000000e+00 : f32
    %15 = vector.broadcast %cst_11 : f32 to vector<8x128xf32>
    %16 = arith.maximumf %14, %15 : vector<8x128xf32>
    %17 = arith.truncf %16 : vector<8x128xf32> to vector<8x128xbf16>
    %c0_12 = arith.constant 0 : index
    %c0_13 = arith.constant 0 : index
    %18 = vector.load %arg6[%c0_12, %c0_13] : memref<128x128xbf16, #tpu.memory_space<vmem>>, vector<128x128xbf16>
    %cst_14 = arith.constant dense<0.000000e+00> : vector<8x128xf32>
    %19 = tpu.matmul %17, %18, %cst_14 {dimension_numbers = #tpu.dot_dimension_numbers<[1], [0], [0], [1], [0, 0, 1, 1], [], []>} : vector<8x128xbf16>, vector<128x128xbf16>, vector<8x128xf32> -> vector<8x128xf32>
    %20 = vector.extract_strided_slice %19 {offsets = [0, 0], sizes = [8, 4], strides = [1, 1]} : vector<8x128xf32> to vector<8x4xf32>
    %c0_15 = arith.constant 0 : index
    %c0_16 = arith.constant 0 : index
    %21 = vector.load %arg7[%c0_15, %c0_16] : memref<1x4xf32, #tpu.memory_space<vmem>>, vector<1x4xf32>
    %22 = vector.broadcast %21 : vector<1x4xf32> to vector<8x4xf32>
    %23 = arith.addf %20, %22 : vector<8x4xf32>
    %24 = arith.negf %23 : vector<8x4xf32>
    %25 = math.exp %24 : vector<8x4xf32>
    %cst_17 = arith.constant 1.000000e+00 : f32
    %26 = vector.broadcast %cst_17 : f32 to vector<8x4xf32>
    %27 = arith.addf %26, %25 : vector<8x4xf32>
    %28 = arith.divf %26, %27 : vector<8x4xf32>
    %cst_18 = arith.constant 6.28318548 : f32
    %29 = vector.broadcast %cst_18 : f32 to vector<8x4xf32>
    %30 = arith.mulf %28, %29 : vector<8x4xf32>
    %cst_19 = arith.constant 3.14159274 : f32
    %31 = vector.broadcast %cst_19 : f32 to vector<8x4xf32>
    %32 = arith.subf %30, %31 : vector<8x4xf32>
    %c0_20 = arith.constant 0 : index
    %c0_21 = arith.constant 0 : index
    %33 = vector.load %arg9[%c0_20, %c0_21] : memref<8x4xf32, #tpu.memory_space<vmem>>, vector<8x4xf32>
    tpu.vector_store %arg9[%c0_20, %c0_21], %32 {strides = array<i32>} : memref<8x4xf32, #tpu.memory_space<vmem>>, vector<8x4xf32>,
    %c0_22 = arith.constant 0 : index
    %c0_23 = arith.constant 0 : index
    %34 = vector.load %arg8[%c0_22, %c0_23] : memref<8x8xf32, #tpu.memory_space<vmem>>, vector<8x8xf32>
    %35 = vector.extract_strided_slice %34 {offsets = [0, 0], sizes = [8, 4], strides = [1, 1]} : vector<8x8xf32> to vector<8x4xf32>
    %36 = vector.extract_strided_slice %34 {offsets = [0, 4], sizes = [8, 4], strides = [1, 1]} : vector<8x8xf32> to vector<8x4xf32>
    %37 = tpu.iota {dimensions = array<i32: 0>} : vector<8x4xi32>
    %c8_i32 = arith.constant 8 : i32
    %38 = arith.muli %arg0, %c8_i32 : i32
    %39 = vector.broadcast %38 : i32 to vector<8x4xi32>
    %40 = arith.addi %37, %39 : vector<8x4xi32>
    %c16_i32 = arith.constant 16 : i32
    %41 = vector.broadcast %c16_i32 : i32 to vector<8x4xi32>
    %42 = arith.cmpi slt, %40, %41 : vector<8x4xi32>
    %43 = arith.mulf %32, %36 : vector<8x4xf32>
    %44 = arith.subf %43, %35 : vector<8x4xf32>
    %cst_24 = arith.constant 0.000000e+00 : f32
    %45 = vector.broadcast %cst_24 : f32 to vector<8x4xf32>
    %46 = arith.select %42, %44, %45 : vector<8x4xi1>, vector<8x4xf32>
    %47 = arith.mulf %46, %46 : vector<8x4xf32>
    %cst_25 = arith.constant dense<0.000000e+00> : vector<4xf32>
    %48 = vector.multi_reduction <add>, %47, %cst_25 [0] : vector<8x4xf32> to vector<4xf32>
    %49 = vector.shape_cast %48 : vector<4xf32> to vector<1x4xf32>
    %50 = vector.shape_cast %49 : vector<1x4xf32> to vector<1x1x4xf32>
    %c0_26 = arith.constant 0 : index
    %c0_27 = arith.constant 0 : index
    %c0_28 = arith.constant 0 : index
    %51 = vector.load %arg10[%c0_26, %c0_27, %c0_28] : memref<1x1x4xf32, #tpu.memory_space<vmem>>, vector<1x1x4xf32>
    tpu.vector_store %arg10[%c0_26, %c0_27, %c0_28], %50 {strides = array<i32>} : memref<1x1x4xf32, #tpu.memory_space<vmem>>, vector<1x1x4xf32>,
    return
  }
  func.func @transform_0(%arg0: i32) -> (i32, i32) {
    %c0_i32 = arith.constant 0 : i32
    %c0_i32_0 = arith.constant 0 : i32
    return %arg0, %c0_i32 : i32, i32
  }
  func.func @transform_1(%arg0: i32) -> (i32, i32) {
    %c0_i32 = arith.constant 0 : i32
    %c0_i32_0 = arith.constant 0 : i32
    %c0_i32_1 = arith.constant 0 : i32
    return %c0_i32, %c0_i32_0 : i32, i32
  }
  func.func @transform_2(%arg0: i32) -> (i32, i32) {
    %c0_i32 = arith.constant 0 : i32
    %c0_i32_0 = arith.constant 0 : i32
    %c0_i32_1 = arith.constant 0 : i32
    return %c0_i32, %c0_i32_0 : i32, i32
  }
  func.func @transform_3(%arg0: i32) -> (i32, i32) {
    %c0_i32 = arith.constant 0 : i32
    %c0_i32_0 = arith.constant 0 : i32
    %c0_i32_1 = arith.constant 0 : i32
    return %c0_i32, %c0_i32_0 : i32, i32
  }
  func.func @transform_4(%arg0: i32) -> (i32, i32) {
    %c0_i32 = arith.constant 0 : i32
    %c0_i32_0 = arith.constant 0 : i32
    %c0_i32_1 = arith.constant 0 : i32
    return %c0_i32, %c0_i32_0 : i32, i32
  }
  func.func @transform_5(%arg0: i32) -> (i32, i32) {
    %c0_i32 = arith.constant 0 : i32
    %c0_i32_0 = arith.constant 0 : i32
    %c0_i32_1 = arith.constant 0 : i32
    return %c0_i32, %c0_i32_0 : i32, i32
  }
  func.func @transform_6(%arg0: i32) -> (i32, i32) {
    %c0_i32 = arith.constant 0 : i32
    %c0_i32_0 = arith.constant 0 : i32
    %c0_i32_1 = arith.constant 0 : i32
    return %c0_i32, %c0_i32_0 : i32, i32
  }
  func.func @transform_7(%arg0: i32) -> (i32, i32) {
    %c0_i32 = arith.constant 0 : i32
    %c0_i32_0 = arith.constant 0 : i32
    return %arg0, %c0_i32 : i32, i32
  }
  func.func @transform_8(%arg0: i32) -> (i32, i32) {
    %c0_i32 = arith.constant 0 : i32
    %c0_i32_0 = arith.constant 0 : i32
    return %arg0, %c0_i32 : i32, i32
  }
  func.func @transform_9(%arg0: i32) -> (i32, i32, i32) {
    %c0_i32 = arith.constant 0 : i32
    %c0_i32_0 = arith.constant 0 : i32
    %c0_i32_1 = arith.constant 0 : i32
    return %arg0, %c0_i32, %c0_i32_0 : i32, i32, i32
  }
}

</mosaic_0001>

<bundles_post_ra>
// kernel: mlm_forward.1
= control target key start
LH: loop header
LB: loop body
LE: loop exit
PB: predicated region body
PF: predicated region fallthrough
CT: control target
= control target key end

     0   :  { %s973_s30 = smov 0   ;;  %s1097_s0 = inlined_call_operand.vmem [shape: f32[16,32], index: 0, kind: input, shape index: {}]   ;;  %s1098_s1 = inlined_call_operand.vmem [shape: bf16[32,128], index: 1, kind: input, shape index: {}]   ;;  %s1099_s2 = inlined_call_operand.vmem [shape: f32[1,128], index: 2, kind: input, shape index: {}]   ;;  %s1100_s3 = inlined_call_operand.vmem [shape: bf16[128,128], index: 3, kind: input, shape index: {}]   ;;  %s1101_s4 = inlined_call_operand.vmem [shape: f32[1,128], index: 4, kind: input, shape index: {}]   ;;  %s1102_s5 = inlined_call_operand.vmem [shape: bf16[128,128], index: 5, kind: input, shape index: {}]   ;;  %s1103_s6 = inlined_call_operand.vmem [shape: f32[1,4], index: 6, kind: input, shape index: {}]   ;;  %s1104_s7 = inlined_call_operand.vmem [shape: f32[16,8], index: 7, kind: input, shape index: {}]   ;;  %s1105_s8 = inlined_call_operand.vmem [shape: f32[16,4], index: 8, kind: output, shape index: {0}]   ;;  %s1106_s9 = inlined_call_operand.vmem [shape: f32[2,1,4], index: 9, kind: output, shape index: {1}]  }
   0x1 LB: > { %s979_s10 = sadd.s32 4294967295, %s918_s30   ;;  %p779_p0 = scmp.ge.s32.totalorder %s918_s30, 1  ;;  %s918_s30 = sphi %s973_s30, %s20_s30  }
   0x2   : > { %p298_p1 = scmp.lt.s32.totalorder %s918_s30, 3 }
   0x4   : > { %p299_p2 = pnand %p779_p0, %p298_p1 }
   0x5   : > { %p339_p3 = scmp.lt.s32.totalorder (!%p299_p2), %s979_s10, 1  ;;  %s807_s28 = sshll.u32 (!%p299_p2), %s979_s10, 3 }
   0x6   : > { %302 = sbr.rel (%p299_p2) target bundleno = 670 (0x29e), region = 52 }
   0xb   : > { %v890_v0 = vld [vmem:[%s1098_s1 + $0x8] sm:$0xff]   ;;  %v920_v1 = vmov 0.0   ;;  %v891_v2 = vld [vmem:[%s1098_s1] sm:$0xff]   ;;  %vm921_vm0 = vmmov 0   ;;  %v892_v3 = vld [vmem:[%s1100_s3 + $0x38] sm:$0xff]   ;;  %s1001_s17 = scalar_select %p339_p3, %s979_s10, 1  ;;  %v662_v47 = vlaneseq  ;;  %v665_v49 = vstv %s807_s28 }
   0xc   : > { %831 = vmatprep.subr.bf16.mxu0 %v920_v1  ;;  %839 = vmatprep.subr.bf16.mxu1 %v920_v1  ;;  %v893_v4 = vld [vmem:[%s1100_s3 + $0x30] sm:$0xff]   ;;  %vm380_vm1 = vcmask 261120   ;;  %v894_v6 = vld [vmem:[%s1100_s3 + $0x28] sm:$0xff]   ;;  %v895_v8 = vld [vmem:[%s1100_s3 + $0x20] sm:$0xff]   ;;  %vm659_vm2 = vcmask 31744   ;;  %vm683_vm4 = vcmask 24576  }
   0xd   : > { %832 = vmatpush3.bf16.msra.mxu0 %v890_v0  ;;  %835 = vmatprep.mubr.msk.bf16.mxu0 %vm921_vm0, %v920_v1  ;;  %s1007_s20 = sshll.u32 %s1001_s17, 3  ;;  %v896_v9 = vld [vmem:[%s1100_s3 + $0x18] sm:$0xff]   ;;  %v897_v10 = vld [vmem:[%s1100_s3 + $0x10] sm:$0xff]   ;;  %v898_v11 = vld [vmem:[%s1100_s3 + $0x8] sm:$0xff]   ;;  %v663_v48 = vshrl.u32 %v662_v47, 7 }
   0xe   : > { %833 = vmatprep.subr.bf16.mxu0 %v920_v1  ;;  %855 = vmatprep.mubr.msk.bf16.mxu1 %vm921_vm0, %v920_v1  ;;  %s342_s23 = scalar_lea.vmem %s1097_s0, %s1007_s20  ;;  %v899_v12 = vld [vmem:[%s1100_s3] sm:$0xff]   ;;  %v900_v13 = vld [vmem:[%s1102_s5 + $0x38] sm:$0xff]   ;;  %v901_v14 = vld [vmem:[%s1102_s5 + $0x30] sm:$0xff]   ;;  %s346_s22 = scalar_lea.vmem %s1104_s7, %s1007_s20 }
   0xf   : > { %840 = vmatpush3.bf16.msra.mxu1 %v892_v3  ;;  %v355_v5 = vld [vmem:[%s342_s23] sm:$0xff]  ;;  %v902_v15 = vld [vmem:[%s1102_s5 + $0x28] sm:$0xff]   ;;  %v904_v17 = vld [vmem:[%s1102_s5 + $0x18] sm:$0xff]   ;;  %s922_s23 = smov 124   ;;  %s350_s12 = scalar_lea.vmem %s1105_s8, %s1007_s20  ;;  %v666_v52 = vadd.s32 %v665_v49, %v663_v48 }
  0x10   : > { %841 = vmatprep.subr.bf16.mxu1 %v920_v1  ;;  %v356_v7 = vpack.c.bf16 %v355_v5, %v355_v5  ;;  %v903_v16 = vld [vmem:[%s1102_s5 + $0x20] sm:$0xff]   ;;  %v905_v18 = vld [vmem:[%s1102_s5 + $0x10] sm:$0xff]   ;;  %v906_v27 = vld [vmem:[%s1102_s5 + $0x8] sm:$0xff]   ;;  %s353_s20 = scalar_lea.vmem %s1106_s9, %s1001_s17 }
  0x11   : > { %834 = vmatpush3.bf16.msra.mxu0 %v891_v2  ;;  %v783_v19 = vld [vmem:[%s1099_s2] ss:$0 sm:$0xff]  ;;  %vm667_vm3 = vcmp.lt.s32.totalorder %v666_v52, 16 }
  0x12   : > { %859 = vmatprep.subr.bf16.mxu0 %v920_v1  ;;  %v907_v28 = vld [vmem:[%s1102_s5] sm:$0xff]  }
  0x13   : > { %842 = vmatpush3.bf16.msra.mxu1 %v893_v4  ;;  %v661_v29 = vld [vmem:[%s346_s22] sm:$0xff] }
  0x14   : > { %843 = vmatprep.subr.bf16.mxu1 %v920_v1  ;;  %836 = vmatmul.mubr.msk.bf16.vlgmr.msra.gmra.mxu0 %vm380_vm1, %v356_v7  ;;  %v787_v30 = vld [vmem:[%s1101_s4] ss:$0 sm:$0xff] }
  0x15   : > { %875 = vmatprep.mubr.msk.bf16.mxu0 %vm921_vm0, %v920_v1  ;;  %860 = vmatpush3.bf16.msra.mxu0 %v900_v13  ;;  %v804_v38 = vld [vmem:[%s1103_s6] ss:$0 sm:$0xff] }
  0x16   : > { %861 = vmatprep.subr.bf16.mxu0 %v920_v1  ;;  %669 = vrot.lane.b32.xlu0 %v661_v29, %s922_s23 }
  0x17   : > { %844 = vmatpush3.bf16.msra.mxu1 %v894_v6 }
  0x18   : > { %845 = vmatprep.subr.bf16.mxu1 %v920_v1 }
  0x19   : > { %862 = vmatpush3.bf16.msra.mxu0 %v901_v14 }
  0x1a   : > { %863 = vmatprep.subr.bf16.mxu0 %v920_v1 }
  0x1b   : > { %846 = vmatpush3.bf16.msra.mxu1 %v895_v8 }
  0x1c   : > { %847 = vmatprep.subr.bf16.mxu1 %v920_v1 }
  0x1d   : > { %864 = vmatpush3.bf16.msra.mxu0 %v902_v15 }
  0x1e   : > { %865 = vmatprep.subr.bf16.mxu0 %v920_v1 }
  0x1f   : > { %848 = vmatpush3.bf16.msra.mxu1 %v896_v9 }
  0x20   : > { %849 = vmatprep.subr.bf16.mxu1 %v920_v1 }
  0x21   : > { %866 = vmatpush3.bf16.msra.mxu0 %v903_v16 }
  0x22   : > { %867 = vmatprep.subr.bf16.mxu0 %v920_v1 }
  0x23   : > { %850 = vmatpush3.bf16.msra.mxu1 %v897_v10 }
  0x24   : > { %851 = vmatprep.subr.bf16.mxu1 %v920_v1 }
  0x25   : > { %868 = vmatpush3.bf16.msra.mxu0 %v904_v17 }
  0x26   : > { %869 = vmatprep.subr.bf16.mxu0 %v920_v1 }
  0x27   : > { %852 = vmatpush3.bf16.msra.mxu1 %v898_v11 }
  0x28   : > { %853 = vmatprep.subr.bf16.mxu1 %v920_v1 }
  0x29   : > { %870 = vmatpush3.bf16.msra.mxu0 %v905_v18 }
  0x2a   : > { %871 = vmatprep.subr.bf16.mxu0 %v920_v1 }
  0x2b   : > { %854 = vmatpush3.bf16.msra.mxu1 %v899_v12 }
  0x2d   : > { %872 = vmatpush3.bf16.msra.mxu0 %v906_v27 }
  0x2e   : > { %873 = vmatprep.subr.bf16.mxu0 %v920_v1 }
  0x31   : > { %874 = vmatpush3.bf16.msra.mxu0 %v907_v28 }
  0x88   : > { %v670_v53 = vpop.permute.xlu0 %669 }
  0xd4   : > { %v418_v20 = vpop.f32.mrf.mxu0 }
  0xd5   : > { %v419_v21 = vadd.f32 %v783_v19, %v418_v20 }
  0xd6   : > { %v837_v22 = vpop.f32.mrf.mxu0 }
  0xd7   : > { %v424_v23 = vmax.f32 %v419_v21, 0.0 }
  0xd8   : > { %v421_v24 = vpop.f32.mrf.mxu0 }
  0xd9   : > { %v425_v25 = vpack.c.bf16 %v424_v23, %v424_v23 }
  0xda   : > { %v838_v26 = vpop.f32.mrf.mxu0 }
  0xdb   : > { %856 = vmatmul.mubr.bf16.vlgmr.msra.gmra.mxu1 %v425_v25 }
 0x19b   : > { %v531_v31 = vpop.f32.mrf.mxu1 }
 0x19c   : > { %v532_v32 = vadd.f32 %v787_v30, %v531_v31 }
 0x19d   : > { %v857_v33 = vpop.f32.mrf.mxu1 }
 0x19e   : > { %v537_v34 = vmax.f32 %v532_v32, 0.0 }
 0x19f   : > { %v534_v35 = vpop.f32.mrf.mxu1 }
 0x1a0   : > { %v538_v36 = vpack.c.bf16 %v537_v34, %v537_v34 }
 0x1a1   : > { %v858_v37 = vpop.f32.mrf.mxu1 }
 0x1a2   : > { %876 = vmatmul.mubr.bf16.vlgmr.msra.gmra.mxu0 %v538_v36 }
 0x262   : > { %v637_v39 = vpop.f32.mrf.mxu0 }
 0x263   : > { %v650_v40 = vadd.f32 %v804_v38, %v637_v39 }
 0x264   : > { %v877_v41 = vpop.f32.mrf.mxu0 }
 0x265   : > { %v805_v42 = vmul.f32 -1.442695, %v650_v40 }
 0x266   : > { %v640_v43 = vpop.f32.mrf.mxu0 }
 0x267   : > { %908 = vpow2.f32 %v805_v42 }
 0x268   : > { %v878_v44 = vpop.f32.mrf.mxu0 }
 0x274   : > { %v909_v45 = vpop.eup %908 }
 0x275   : > { %v654_v46 = vadd.f32 1.0, %v909_v45 }
 0x277   : > { %910 = vrcp.f32 %v654_v46 }
 0x284   : > { %v911_v50 = vpop.eup %910 }
 0x285   : > { %v657_v51 = vmul.f32 6.2831855, %v911_v50 }
 0x287   : > { %v806_v54 = vadd.f32 -3.1415927, %v657_v51 }
 0x289   : > { %660 = vst.msk [vmem:[%s350_s12] sm:$0xff] %vm659_vm2, %v806_v54  ;;  %v672_v55 = vmul.f32 %v806_v54, %v670_v53 }
 0x28b   : > { %v673_v56 = vsub.f32 %v672_v55, %v661_v29 }
 0x28d   : > { %v674_v57 = vsel %vm667_vm3, %v673_v56, 0.0 }
 0x28e   : > { %v675_v58 = vmul.f32 %v674_v57, %v674_v57 }
 0x290   : > { %v676_v59 = vsel %vm659_vm2, %v675_v58, 0.0 }
 0x291   : > { %v677_v60 = vrot.slane %v676_v59, 4 }
 0x293   : > { %v678_v61 = vadd.f32 %v677_v60, %v676_v59 }
 0x295   : > { %v679_v62 = vrot.slane %v678_v61, 2 }
 0x297   : > { %v680_v63 = vadd.f32 %v679_v62, %v678_v61 }
 0x299   : > { %v681_v0 = vrot.slane %v680_v63, 1 }
 0x29b   : > { %v682_v1 = vadd.f32 %v681_v0, %v680_v63 }
 0x29d   : > { %684 = vst.msk [vmem:[%s353_s20] sm:$0x1] %vm683_vm4, %v682_v1 }
 0x29e PF: > { %s20_s30 = sadd.s32 1, %s918_s30  }
 0x29f   : > { %p17_p4 = scmp.ge.s32.totalorder %s20_s30, 4  }
 0x2a1   :  { %19 = sbr.rel (!%p17_p4) target bundleno = 1 (0x1), region = 97 }

</bundles_post_ra>
